<compile_context>
chip_gen: v6e
topology: v6e:2x2x1
jax: 0.10.0
libtpu: 0.0.40
codegen_flags: <defaults>
</compile_context>

<pallas_src>
import jax
import jax.numpy as jnp
import numpy as np
from jax.experimental import pallas as pl
from jax.experimental.pallas import tpu as pltpu


_ROW_ALIGN = 16  # bf16 sublane tile is (16, 128): keep every slab block tile-aligned.


def _round_up(n, m):
    return ((n + m - 1) // m) * m


def _pack_param_slab(hidden, w_out, b_out, num_domain, dim_style, param_dtype):
    """Packs trunk W/b, output W/b and the two constant gather tables into one
    contiguous (rows, max_width) slab.  Done once at init (not per forward)."""
    nd_ds = num_domain * dim_style
    layers = [(np.asarray(w, np.float32), np.asarray(b, np.float32)) for w, b in hidden]
    layers.append((np.asarray(w_out, np.float32), np.asarray(b_out, np.float32)))
    max_w = max([w.shape[1] for w, _ in layers] + [nd_ds, dim_style])

    pieces = []
    row = 0

    def push(a):
        nonlocal row
        start = row
        padded_rows = _round_up(a.shape[0], _ROW_ALIGN)
        blk = np.zeros((padded_rows, max_w), np.float32)
        blk[: a.shape[0], : a.shape[1]] = a
        pieces.append(blk)
        row += padded_rows
        return start

    block_meta = []  # (w_row, in_dim, b_row, out_dim, relu)
    for idx, (w, b) in enumerate(layers):
        w_row = push(w)
        b_row = push(b.reshape(1, -1))
        block_meta.append((w_row, w.shape[0], b_row, w.shape[1], idx < len(hidden)))

    # Constant gather tables (baked into the slab — no separate DMAs, no
    # closed-over kernel constants):
    #   dom_of_lane[0, j] = j // dim_style   (which domain lane j belongs to)
    #   proj[j, d]        = 1 iff j % dim_style == d
    dom_of_lane = (np.arange(nd_ds) // dim_style).astype(np.float32).reshape(1, nd_ds)
    proj = ((np.arange(nd_ds)[:, None] % dim_style)
            == np.arange(dim_style)[None, :]).astype(np.float32)
    dom_row = push(dom_of_lane)
    proj_row = push(proj)

    slab = jnp.asarray(np.concatenate(pieces, axis=0)).astype(param_dtype)
    return slab, block_meta, dom_row, proj_row


def _make_mapnet_kernel(block_meta, dom_row, proj_row, nd_ds, dim_style, cdt):
    """Kernel body: (dom, x, slab) -> (B, dim_style).  All offsets are static."""

    def kernel(dom_ref, x_ref, slab_ref, out_ref):
        # --- MLP trunk + final Linear, weights read from the packed slab -------
        h = x_ref[...]                                            # (1, dim_latent) f32
        for (w_row, in_dim, b_row, out_dim, relu) in block_meta:
            w = slab_ref[w_row:w_row + in_dim, :][:, :out_dim]    # (in, out)  cdt
            b = slab_ref[b_row:b_row + 1, :][:, :out_dim]         # (1, out)   cdt
            y = jnp.dot(h.astype(cdt), w,
                        preferred_element_type=jnp.float32) + b.astype(jnp.float32)
            h = jnp.maximum(y, 0.0) if relu else y
        # h == s : (1, ND*DS) f32

        # --- gather_domain as lane-mask + one matmul ---------------------------
        dom_of_lane = slab_ref[dom_row:dom_row + 1, :][:, :nd_ds].astype(jnp.float32)
        proj = slab_ref[proj_row:proj_row + nd_ds, :][:, :dim_style]  # 0/1, exact in cdt
        dom = dom_ref[...].astype(jnp.float32)                        # (B, 1)
        sel = (dom_of_lane == dom).astype(jnp.float32)                # (B, ND*DS)
        masked = (sel * h).astype(cdt)                                # (B, ND*DS)
        # out[b, d] = sum_j masked[b, j] * proj[j, d] = s[0, dom[b]*DS + d]
        out_ref[...] = jnp.dot(masked, proj, preferred_element_type=jnp.float32)

    return kernel


def build_mapping_network(params, *, num_domain, dim_style,
                          param_dtype=jnp.bfloat16):
    """Packs parameters once and returns a jitted forward(x, target_domain)."""
    hidden = params["hidden"]                  # list of (W (in,out), b (out,))
    w_out, b_out = params["out"]               # (dim, ND*DS), (ND*DS,)
    nd_ds = num_domain * dim_style

    slab, block_meta, dom_row, proj_row = _pack_param_slab(
        hidden, w_out, b_out, num_domain, dim_style, param_dtype)
    kernel = _make_mapnet_kernel(block_meta, dom_row, proj_row, nd_ds, dim_style,
                                 param_dtype)

    trunk_flops = sum(2 * int(w.shape[0]) * int(w.shape[1]) for w, _ in hidden)
    trunk_flops += 2 * int(w_out.shape[0]) * nd_ds
    slab_bytes = int(slab.size) * slab.dtype.itemsize

    @jax.jit
    def _forward(slab_arg, x, target_domain):
        bsz = target_domain.shape[0]
        # Out-of-range domain ids are clamped to the last domain (torch's gather
        # would raise; the mask-gather has no runtime bounds check so clamping is
        # the safe, documented behavior here).
        dom = jnp.clip(target_domain.reshape(bsz, 1).astype(jnp.int32),
                       0, num_domain - 1)
        cost = pl.CostEstimate(
            flops=int(trunk_flops + 2 * bsz * nd_ds * dim_style),
            transcendentals=0,
            bytes_accessed=int(slab_bytes + x.size * 4 + bsz * 4
                               + bsz * dim_style * 4),
        )
        out2d = pl.pallas_call(
            kernel,
            out_shape=jax.ShapeDtypeStruct((bsz, dim_style), jnp.float32),
            in_specs=[pl.BlockSpec(memory_space=pltpu.MemorySpace.VMEM)] * 3,
            out_specs=pl.BlockSpec(memory_space=pltpu.MemorySpace.VMEM),
            cost_estimate=cost,
        )(dom, x.astype(jnp.float32), slab_arg)
        # Restore torch output shape (B, 1, dim_style) outside the kernel.
        return out2d.reshape(bsz, 1, dim_style)

    def forward(x, target_domain):
        return _forward(slab, x, target_domain)

    return forward


def reference_forward(x, target_domain, params, *, num_domain, dim_style):
    """Pure-JAX f32 reference mirroring the torch forward exactly."""
    h = x
    for w, b in params["hidden"]:
        h = jnp.maximum(
            jnp.dot(h, w, precision=jax.lax.Precision.HIGHEST) + b, 0.0)
    w_out, b_out = params["out"]
    s = jnp.dot(h, w_out, precision=jax.lax.Precision.HIGHEST) + b_out  # (1, ND*DS)
    bsz = target_domain.shape[0]
    s = jnp.tile(s, (bsz, 1)).reshape(bsz, num_domain, dim_style)
    dom = target_domain.reshape(bsz)
    return s[jnp.arange(bsz), dom, :][:, None, :]                        # (B, 1, DS)


if __name__ == "__main__":
    # config_mapnet
    dim_latent = 16
    dim = 32
    n_mlp = 2
    num_domain = 4
    dim_style = 8
    batch_size = 3

    key = jax.random.PRNGKey(0)
    keys = jax.random.split(key, 16)

    # Deterministic synthetic parameters (W stored as (in, out), y = x @ W + b).
    hidden_dims = [(dim_latent, dim)] + [(dim, dim)] * n_mlp
    hidden = []
    for li, (din, dout) in enumerate(hidden_dims):
        w = jax.random.normal(keys[2 * li], (din, dout), jnp.float32) * 0.1
        b = jax.random.normal(keys[2 * li + 1], (dout,), jnp.float32) * 0.05
        hidden.append((w, b))
    w_out = jax.random.normal(keys[10], (dim, num_domain * dim_style), jnp.float32) * 0.1
    b_out = jax.random.normal(keys[11], (num_domain * dim_style,), jnp.float32) * 0.05
    params = {"hidden": hidden, "out": (w_out, b_out)}

    # Inputs: single latent vector + per-sample target domain indices (B, 1, 1).
    x = jax.random.normal(keys[12], (1, dim_latent), jnp.float32)
    target_domain = jax.random.randint(
        keys[13], (batch_size, 1, 1), 0, num_domain, dtype=jnp.int32)

    forward = build_mapping_network(
        params, num_domain=num_domain, dim_style=dim_style)

    out = forward(x, target_domain)
    out = jax.block_until_ready(out)

    ref = reference_forward(
        x, target_domain, params, num_domain=num_domain, dim_style=dim_style)
    np.testing.assert_allclose(np.asarray(out), np.asarray(ref), rtol=2e-2, atol=2e-2)
    assert out.shape == (batch_size, 1, dim_style)

    print("KERNEL_OK")
</pallas_src>

<mosaic_0001>
module attributes {stable_mosaic.version = 11 : i64} {
  func.func @kernel(%arg0: memref<3x1xi32, #tpu.memory_space<vmem>>, %arg1: memref<1x16xf32, #tpu.memory_space<vmem>>, %arg2: memref<224x32xbf16, #tpu.memory_space<vmem>>, %arg3: memref<3x8xf32, #tpu.memory_space<vmem>>) attributes {dimension_semantics = [], scalar_prefetch = 0 : i64, scratch_operands = 0 : i64, tpu.core_type = #tpu.core_type<tc>} {
    %c0 = arith.constant 0 : index
    %c0_0 = arith.constant 0 : index
    %0 = vector.load %arg1[%c0, %c0_0] : memref<1x16xf32, #tpu.memory_space<vmem>>, vector<1x16xf32>
    %c0_1 = arith.constant 0 : index
    %c0_2 = arith.constant 0 : index
    %1 = vector.load %arg2[%c0_1, %c0_2] : memref<224x32xbf16, #tpu.memory_space<vmem>>, vector<16x32xbf16>
    %c16 = arith.constant 16 : index
    %c0_3 = arith.constant 0 : index
    %2 = vector.load %arg2[%c16, %c0_3] : memref<224x32xbf16, #tpu.memory_space<vmem>>, vector<1x32xbf16>
    %3 = arith.truncf %0 : vector<1x16xf32> to vector<1x16xbf16>
    %cst = arith.constant dense<0.000000e+00> : vector<1x32xf32>
    %4 = tpu.matmul %3, %1, %cst {dimension_numbers = #tpu.dot_dimension_numbers<[1], [0], [0], [1], [0, 0, 1, 1], [], []>} : vector<1x16xbf16>, vector<16x32xbf16>, vector<1x32xf32> -> vector<1x32xf32>
    %5 = arith.extf %2 : vector<1x32xbf16> to vector<1x32xf32>
    %6 = arith.addf %4, %5 : vector<1x32xf32>
    %cst_4 = arith.constant 0.000000e+00 : f32
    %7 = vector.broadcast %cst_4 : f32 to vector<1x32xf32>
    %8 = arith.maximumf %6, %7 : vector<1x32xf32>
    %c32 = arith.constant 32 : index
    %c0_5 = arith.constant 0 : index
    %9 = vector.load %arg2[%c32, %c0_5] : memref<224x32xbf16, #tpu.memory_space<vmem>>, vector<32x32xbf16>
    %c64 = arith.constant 64 : index
    %c0_6 = arith.constant 0 : index
    %10 = vector.load %arg2[%c64, %c0_6] : memref<224x32xbf16, #tpu.memory_space<vmem>>, vector<1x32xbf16>
    %11 = arith.truncf %8 : vector<1x32xf32> to vector<1x32xbf16>
    %cst_7 = arith.constant dense<0.000000e+00> : vector<1x32xf32>
    %12 = tpu.matmul %11, %9, %cst_7 {dimension_numbers = #tpu.dot_dimension_numbers<[1], [0], [0], [1], [0, 0, 1, 1], [], []>} : vector<1x32xbf16>, vector<32x32xbf16>, vector<1x32xf32> -> vector<1x32xf32>
    %13 = arith.extf %10 : vector<1x32xbf16> to vector<1x32xf32>
    %14 = arith.addf %12, %13 : vector<1x32xf32>
    %cst_8 = arith.constant 0.000000e+00 : f32
    %15 = vector.broadcast %cst_8 : f32 to vector<1x32xf32>
    %16 = arith.maximumf %14, %15 : vector<1x32xf32>
    %c80 = arith.constant 80 : index
    %c0_9 = arith.constant 0 : index
    %17 = vector.load %arg2[%c80, %c0_9] : memref<224x32xbf16, #tpu.memory_space<vmem>>, vector<32x32xbf16>
    %c112 = arith.constant 112 : index
    %c0_10 = arith.constant 0 : index
    %18 = vector.load %arg2[%c112, %c0_10] : memref<224x32xbf16, #tpu.memory_space<vmem>>, vector<1x32xbf16>
    %19 = arith.truncf %16 : vector<1x32xf32> to vector<1x32xbf16>
    %cst_11 = arith.constant dense<0.000000e+00> : vector<1x32xf32>
    %20 = tpu.matmul %19, %17, %cst_11 {dimension_numbers = #tpu.dot_dimension_numbers<[1], [0], [0], [1], [0, 0, 1, 1], [], []>} : vector<1x32xbf16>, vector<32x32xbf16>, vector<1x32xf32> -> vector<1x32xf32>
    %21 = arith.extf %18 : vector<1x32xbf16> to vector<1x32xf32>
    %22 = arith.addf %20, %21 : vector<1x32xf32>
    %cst_12 = arith.constant 0.000000e+00 : f32
    %23 = vector.broadcast %cst_12 : f32 to vector<1x32xf32>
    %24 = arith.maximumf %22, %23 : vector<1x32xf32>
    %c128 = arith.constant 128 : index
    %c0_13 = arith.constant 0 : index
    %25 = vector.load %arg2[%c128, %c0_13] : memref<224x32xbf16, #tpu.memory_space<vmem>>, vector<32x32xbf16>
    %c160 = arith.constant 160 : index
    %c0_14 = arith.constant 0 : index
    %26 = vector.load %arg2[%c160, %c0_14] : memref<224x32xbf16, #tpu.memory_space<vmem>>, vector<1x32xbf16>
    %27 = arith.truncf %24 : vector<1x32xf32> to vector<1x32xbf16>
    %cst_15 = arith.constant dense<0.000000e+00> : vector<1x32xf32>
    %28 = tpu.matmul %27, %25, %cst_15 {dimension_numbers = #tpu.dot_dimension_numbers<[1], [0], [0], [1], [0, 0, 1, 1], [], []>} : vector<1x32xbf16>, vector<32x32xbf16>, vector<1x32xf32> -> vector<1x32xf32>
    %29 = arith.extf %26 : vector<1x32xbf16> to vector<1x32xf32>
    %30 = arith.addf %28, %29 : vector<1x32xf32>
    %c176 = arith.constant 176 : index
    %c0_16 = arith.constant 0 : index
    %31 = vector.load %arg2[%c176, %c0_16] : memref<224x32xbf16, #tpu.memory_space<vmem>>, vector<1x32xbf16>
    %32 = arith.extf %31 : vector<1x32xbf16> to vector<1x32xf32>
    %c192 = arith.constant 192 : index
    %c0_17 = arith.constant 0 : index
    %33 = vector.load %arg2[%c192, %c0_17] : memref<224x32xbf16, #tpu.memory_space<vmem>>, vector<32x32xbf16>
    %34 = vector.extract_strided_slice %33 {offsets = [0, 0], sizes = [32, 8], strides = [1, 1]} : vector<32x32xbf16> to vector<32x8xbf16>
    %c0_18 = arith.constant 0 : index
    %c0_19 = arith.constant 0 : index
    %35 = vector.load %arg0[%c0_18, %c0_19] : memref<3x1xi32, #tpu.memory_space<vmem>>, vector<3x1xi32>
    %36 = arith.sitofp %35 : vector<3x1xi32> to vector<3x1xf32>
    %37 = vector.broadcast %32 : vector<1x32xf32> to vector<3x32xf32>
    %38 = vector.broadcast %36 : vector<3x1xf32> to vector<3x32xf32>
    %39 = arith.cmpf oeq, %37, %38 : vector<3x32xf32>
    %40 = arith.extui %39 : vector<3x32xi1> to vector<3x32xi32>
    %41 = arith.sitofp %40 : vector<3x32xi32> to vector<3x32xf32>
    %42 = vector.broadcast %30 : vector<1x32xf32> to vector<3x32xf32>
    %43 = arith.mulf %41, %42 : vector<3x32xf32>
    %44 = arith.truncf %43 : vector<3x32xf32> to vector<3x32xbf16>
    %cst_20 = arith.constant dense<0.000000e+00> : vector<3x8xf32>
    %45 = tpu.matmul %44, %34, %cst_20 {dimension_numbers = #tpu.dot_dimension_numbers<[1], [0], [0], [1], [0, 0, 1, 1], [], []>} : vector<3x32xbf16>, vector<32x8xbf16>, vector<3x8xf32> -> vector<3x8xf32>
    %c0_21 = arith.constant 0 : index
    %c0_22 = arith.constant 0 : index
    %46 = vector.load %arg3[%c0_21, %c0_22] : memref<3x8xf32, #tpu.memory_space<vmem>>, vector<3x8xf32>
    tpu.vector_store %arg3[%c0_21, %c0_22], %45 {strides = array<i32>} : memref<3x8xf32, #tpu.memory_space<vmem>>, vector<3x8xf32>,
    return
  }
}

</mosaic_0001>

<bundles_post_ra>
// kernel: _forward.1
= control target key start
LH: loop header
LB: loop body
LE: loop exit
PB: predicated region body
PF: predicated region fallthrough
CT: control target
= control target key end

     0   :  { %v428_v0 = vmov 0.0   ;;  %vm429_vm0 = vmmov 0   ;;  %vm27_vm1 = vcmask 130048   ;;  %vm91_vm2 = vcmask 261120   ;;  %s526_s2 = inlined_call_operand.vmem [shape: bf16[224,32], index: 2, kind: input, shape index: {}]   ;;  %s527_s1 = inlined_call_operand.vmem [shape: f32[1,16], index: 1, kind: input, shape index: {}]   ;;  %s528_s0 = inlined_call_operand.vmem [shape: s32[3,1], index: 0, kind: input, shape index: {}]   ;;  %s529_s3 = inlined_call_operand.vmem [shape: f32[3,8], index: 3, kind: output, shape index: {}]  }
   0x1   :  { %377 = vmatprep.subr.bf16.mxu0 %v428_v0  ;;  %v419_v1 = vld [vmem:[%s526_s2] sm:$0xff]   ;;  %379 = vmatprep.mubr.msk.bf16.mxu0 %vm429_vm0, %v428_v0  ;;  %v420_v4 = vld [vmem:[%s526_s2 + $0x18] sm:$0xff]   ;;  %v421_v5 = vld [vmem:[%s526_s2 + $0x10] sm:$0xff]   ;;  %v430_v28 = vmov 0   ;;  %v269_v42 = vlaneseq  ;;  %vm342_vm4 = vcmask 59392  }
   0x2   :  { %v15_v2 = vld [vmem:[%s527_s1] sm:$0x1]  ;;  %383 = vmatprep.subr.bf16.mxu1 %v428_v0  ;;  %387 = vmatprep.mubr.msk.bf16.mxu1 %vm429_vm0, %v428_v0  ;;  %v422_v6 = vld [vmem:[%s526_s2 + $0x30] sm:$0xff]   ;;  %v18_v7 = vld [vmem:[%s526_s2 + $0x8] sm:$0x1] }
   0x3   :  { %378 = vmatpush3.bf16.msra.mxu0 %v419_v1  ;;  %v19_v3 = vpack.c.bf16 %v15_v2, %v15_v2  ;;  %384 = vmatpush3.bf16.msra.mxu1 %v420_v4  ;;  %v20_v8 = vunpack.c.l.bf16 %v18_v7  ;;  %v423_v16 = vld [vmem:[%s526_s2 + $0x28] sm:$0xff]   ;;  %v76_v18 = vld [vmem:[%s526_s2 + $0x20] sm:$0x1]  ;;  %v140_v31 = vld [vmem:[%s526_s2 + $0x38] sm:$0x1]  ;;  %v270_v43 = vshrl.u32 %v269_v42, 7 }
   0x4   :  { %391 = vmatprep.subr.bf16.mxu0 %v428_v0  ;;  %385 = vmatprep.subr.bf16.mxu1 %v428_v0  ;;  %v424_v17 = vld [vmem:[%s526_s2 + $0x48] sm:$0xff]   ;;  %v78_v19 = vunpack.c.l.bf16 %v76_v18  ;;  %v425_v27 = vld [vmem:[%s526_s2 + $0x40] sm:$0xff]   ;;  %v142_v32 = vunpack.c.l.bf16 %v140_v31  ;;  %v261_v44 = vld [vmem:[%s526_s2 + $0x58] sm:$0x1] }
   0x5   :  { %418 = vset.pattern.permute.xlu0 %v430_v28  ;;  %v267_v29 = vld [vmem:[%s528_s0] sm:$0x7]  ;;  %v426_v40 = vld [vmem:[%s526_s2 + $0x68] sm:$0xff]   ;;  %v271_v45 = vsub.s32 0, %v270_v43  ;;  %v262_v46 = vunpack.c.l.bf16 %v261_v44  ;;  %v203_v47 = vld [vmem:[%s526_s2 + $0x50] sm:$0x1] }
   0x6   :  { %380 = vmatmul.mubr.msk.bf16.vlgmr.msra.gmra.mxu0 %vm27_vm1, %v19_v3  ;;  %v268_v30 = vcvt.s32.f32 %v267_v29  ;;  %v427_v41 = vld [vmem:[%s526_s2 + $0x60] sm:$0xff]   ;;  %v205_v50 = vunpack.c.l.bf16 %v203_v47 }
   0x7   :  { %395 = vmatprep.mubr.msk.bf16.mxu0 %vm429_vm0, %v428_v0  ;;  %386 = vmatpush3.bf16.msra.mxu1 %v421_v5  ;;  %v272_v48 = vrot.slane %v262_v46, %v271_v45 }
   0x8   :  { %399 = vmatprep.subr.bf16.mxu1 %v428_v0  ;;  %392 = vmatpush3.bf16.msra.mxu0 %v422_v6 }
   0x9   :  { %393 = vmatprep.subr.bf16.mxu0 %v428_v0  ;;  %275 = vperm.xlu0 %418, %v268_v30  }
   0xc   :  { %394 = vmatpush3.bf16.msra.mxu0 %v423_v16 }
   0xd   :  { %407 = vmatprep.subr.bf16.mxu0 %v428_v0 }
  0x84   :  { %v276_v49 = vpop.permute.xlu0 %275 }
  0x85   :  { %vm278_vm3 = vcmp.eq.f32.partialorder %v272_v48, %v276_v49 }
  0x86   :  { %v359_v54 = vsel %vm278_vm3, 1.0, %v428_v0 }
  0xc6   :  { %v65_v9 = vpop.f32.mrf.mxu0 }
  0xc7   :  { %v66_v10 = vadd.f32 %v65_v9, %v20_v8 }
  0xc8   :  { %v381_v11 = vpop.f32.mrf.mxu0 }
  0xc9   :  { %v71_v12 = vmax.f32 %v66_v10, 0.0 }
  0xca   :  { %v68_v13 = vpop.f32.mrf.mxu0 }
  0xcb   :  { %v77_v14 = vpack.c.bf16 %v71_v12, %v71_v12 }
  0xcc   :  { %v382_v15 = vpop.f32.mrf.mxu0 }
  0xcd   :  { %388 = vmatmul.mubr.msk.bf16.vlgmr.msra.gmra.mxu1 %vm91_vm2, %v77_v14 }
  0xce   :  { %403 = vmatprep.mubr.msk.bf16.mxu1 %vm429_vm0, %v428_v0  ;;  %400 = vmatpush3.bf16.msra.mxu1 %v424_v17 }
  0xcf   :  { %401 = vmatprep.subr.bf16.mxu1 %v428_v0 }
  0xd2   :  { %402 = vmatpush3.bf16.msra.mxu1 %v425_v27 }
 0x18d   :  { %v129_v20 = vpop.f32.mrf.mxu1 }
 0x18e   :  { %v130_v21 = vadd.f32 %v129_v20, %v78_v19 }
 0x18f   :  { %v389_v22 = vpop.f32.mrf.mxu1 }
 0x190   :  { %v135_v23 = vmax.f32 %v130_v21, 0.0 }
 0x191   :  { %v132_v24 = vpop.f32.mrf.mxu1 }
 0x192   :  { %v141_v25 = vpack.c.bf16 %v135_v23, %v135_v23 }
 0x193   :  { %v390_v26 = vpop.f32.mrf.mxu1 }
 0x194   :  { %396 = vmatmul.mubr.msk.bf16.vlgmr.msra.gmra.mxu0 %vm91_vm2, %v141_v25 }
 0x195   :  { %411 = vmatprep.mubr.msk.bf16.mxu0 %vm429_vm0, %v428_v0  ;;  %408 = vmatpush3.bf16.msra.mxu0 %v426_v40 }
 0x196   :  { %409 = vmatprep.subr.bf16.mxu0 %v428_v0 }
 0x199   :  { %410 = vmatpush3.bf16.msra.mxu0 %v427_v41 }
 0x254   :  { %v192_v33 = vpop.f32.mrf.mxu0 }
 0x255   :  { %v193_v34 = vadd.f32 %v192_v33, %v142_v32 }
 0x256   :  { %v397_v35 = vpop.f32.mrf.mxu0 }
 0x257   :  { %v198_v36 = vmax.f32 %v193_v34, 0.0 }
 0x258   :  { %v195_v37 = vpop.f32.mrf.mxu0 }
 0x259   :  { %v204_v38 = vpack.c.bf16 %v198_v36, %v198_v36 }
 0x25a   :  { %v398_v39 = vpop.f32.mrf.mxu0 }
 0x25b   :  { %404 = vmatmul.mubr.msk.bf16.vlgmr.msra.gmra.mxu1 %vm91_vm2, %v204_v38 }
 0x31b   :  { %v255_v51 = vpop.f32.mrf.mxu1 }
 0x31c   :  { %v256_v52 = vadd.f32 %v255_v51, %v205_v50 }
 0x31d   :  { %v405_v53 = vpop.f32.mrf.mxu1 }
 0x31e   :  { %v284_v55 = vrot.slane %v256_v52, %v271_v45 }
 0x31f   :  { %v258_v56 = vpop.f32.mrf.mxu1 }
 0x320   :  { %v285_v57 = vmul.f32 %v359_v54, %v284_v55 }
 0x321   :  { %v406_v58 = vpop.f32.mrf.mxu1 }
 0x322   :  { %v286_v59 = vpack.c.bf16 %v285_v57, %v285_v57 }
 0x324   :  { %412 = vmatmul.mubr.msk.bf16.vlgmr.msra.gmra.mxu0 %vm91_vm2, %v286_v59 }
 0x3e4   :  { %v336_v60 = vpop.f32.mrf.mxu0 }
 0x3e5   :  { %343 = vst.msk [vmem:[%s529_s3] sm:$0x7] %vm342_vm4, %v336_v60 }
 0x3e6   :  { %v413_v61 = vpop.f32.mrf.mxu0 }
 0x3e8   :  { %v339_v62 = vpop.f32.mrf.mxu0 }
 0x3ea   :  { %v414_v63 = vpop.f32.mrf.mxu0 }

</bundles_post_ra>
